<compile_context>
chip_gen: v7x
topology: tpu7x:2x2x1
jax: 0.10.0
libtpu: 0.0.40
codegen_flags: <defaults>
</compile_context>

<pallas_src>
import jax
import jax.numpy as jnp
from jax.experimental import pallas as pl
from jax.experimental.pallas import tpu as pltpu

K_FEATURES = 128   # fixed by the module: input.view(B, 128) -> Linear(128, C)
LANES = 128
SUBLANES = 8


def _linear_kernel(x_ref, w_ref, b_ref, o_ref):
    # One (tm, 128) x (128, tn) MXU matmul per grid step; bias add fused on VPU.
    acc = jnp.dot(x_ref[...], w_ref[...], preferred_element_type=jnp.float32)
    o_ref[...] = (acc + b_ref[...].astype(jnp.float32)).astype(o_ref.dtype)


def _round_up(x, m):
    return ((x + m - 1) // m) * m


def classifier_forward(x, weight, bias, *, tm=256, tn=512):
    """Pallas equivalent of Classifier.forward.

    x      : (B, ...) with prod(...) == 128
    weight : (num_classes, 128)   (PyTorch nn.Linear layout)
    bias   : (num_classes,)
    returns: (B, num_classes)
    """
    batch = x.shape[0]
    x2 = x.reshape(batch, K_FEATURES)
    num_classes = weight.shape[0]

    # Lane-dense, (8,128)-aligned operands.  Weight/bias are tiny, so padding
    # them to lane width is negligible; batch rows pad up to the sublane tile.
    w_t = weight.T                               # (128, num_classes)

    tm = min(tm, _round_up(batch, SUBLANES))
    tn = min(tn, _round_up(num_classes, LANES))
    m_pad = _round_up(batch, tm)
    n_pad = _round_up(num_classes, tn)

    if m_pad != batch:
        x2 = jnp.pad(x2, ((0, m_pad - batch), (0, 0)))
    if n_pad != num_classes:
        w_t = jnp.pad(w_t, ((0, 0), (0, n_pad - num_classes)))
        bias = jnp.pad(bias, (0, n_pad - num_classes))
    b2 = bias.reshape(1, n_pad)

    grid = (m_pad // tm, n_pad // tn)

    out = pl.pallas_call(
        _linear_kernel,
        out_shape=jax.ShapeDtypeStruct((m_pad, n_pad), x.dtype),
        grid_spec=pltpu.PrefetchScalarGridSpec(
            num_scalar_prefetch=0,
            grid=grid,
            in_specs=[
                pl.BlockSpec((tm, K_FEATURES), lambda i, j: (i, 0)),
                pl.BlockSpec((K_FEATURES, tn), lambda i, j: (0, j)),
                pl.BlockSpec((1, tn), lambda i, j: (0, j)),
            ],
            out_specs=pl.BlockSpec((tm, tn), lambda i, j: (i, j)),
        ),
        compiler_params=pltpu.CompilerParams(
            # Both axes are independent output tiles -> megacore-shardable.
            dimension_semantics=("parallel", "parallel"),
        ),
    )(x2, w_t, b2)

    return out[:batch, :num_classes]


if __name__ == "__main__":
    key = jax.random.PRNGKey(0)
    k_x, k_w, k_b = jax.random.split(key, 3)

    # Small shapes consistent with the module: 2 * 8 * 8 = 128 features/sample.
    batch, channels, h, w = 2, 2, 8, 8
    num_classes = 10

    x = jax.random.normal(k_x, (batch, channels, h, w), dtype=jnp.float32)

    # PyTorch nn.Linear default init: U(-1/sqrt(fan_in), 1/sqrt(fan_in)).
    bound = 1.0 / float(jnp.sqrt(jnp.float32(K_FEATURES)))
    weight = jax.random.uniform(
        k_w, (num_classes, K_FEATURES), minval=-bound, maxval=bound,
        dtype=jnp.float32)
    bias = jax.random.uniform(
        k_b, (num_classes,), minval=-bound, maxval=bound, dtype=jnp.float32)

    out = jax.jit(classifier_forward)(x, weight, bias)
    out = jax.block_until_ready(out)

    ref = x.reshape(batch, K_FEATURES) @ weight.T + bias
    assert out.shape == (batch, num_classes), out.shape
    assert jnp.allclose(out, ref, rtol=1e-5, atol=1e-5), (out, ref)
    print("KERNEL_OK")
</pallas_src>

<mosaic_0001>
module attributes {stable_mosaic.version = 11 : i64} {
  func.func @_linear_kernel(%arg0: i32, %arg1: i32, %arg2: memref<8x128xf32, #tpu.memory_space<vmem>>, %arg3: memref<128x128xf32, #tpu.memory_space<vmem>>, %arg4: memref<1x128xf32, #tpu.memory_space<vmem>>, %arg5: memref<8x128xf32, #tpu.memory_space<vmem>>) attributes {dimension_semantics = [#tpu.dimension_semantics<parallel>, #tpu.dimension_semantics<parallel>], iteration_bounds = array<i64: 1, 1>, scalar_prefetch = 0 : i64, scratch_operands = 0 : i64, tpu.core_type = #tpu.core_type<tc>, window_params = [{transform_indices = @transform_0, window_bounds = array<i64: 8, 128>}, {transform_indices = @transform_1, window_bounds = array<i64: 128, 128>}, {transform_indices = @transform_2, window_bounds = array<i64: 1, 128>}, {transform_indices = @transform_3, window_bounds = array<i64: 8, 128>}]} {
    %c0 = arith.constant 0 : index
    %c0_0 = arith.constant 0 : index
    %0 = vector.load %arg2[%c0, %c0_0] : memref<8x128xf32, #tpu.memory_space<vmem>>, vector<8x128xf32>
    %c0_1 = arith.constant 0 : index
    %c0_2 = arith.constant 0 : index
    %1 = vector.load %arg3[%c0_1, %c0_2] : memref<128x128xf32, #tpu.memory_space<vmem>>, vector<128x128xf32>
    %cst = arith.constant dense<0.000000e+00> : vector<8x128xf32>
    %2 = tpu.matmul %0, %1, %cst {dimension_numbers = #tpu.dot_dimension_numbers<[1], [0], [0], [1], [0, 0, 1, 1], [], []>} : vector<8x128xf32>, vector<128x128xf32>, vector<8x128xf32> -> vector<8x128xf32>
    %c0_3 = arith.constant 0 : index
    %c0_4 = arith.constant 0 : index
    %3 = vector.load %arg4[%c0_3, %c0_4] : memref<1x128xf32, #tpu.memory_space<vmem>>, vector<1x128xf32>
    %4 = vector.broadcast %3 : vector<1x128xf32> to vector<8x128xf32>
    %5 = arith.addf %2, %4 : vector<8x128xf32>
    %c0_5 = arith.constant 0 : index
    %c0_6 = arith.constant 0 : index
    %6 = vector.load %arg5[%c0_5, %c0_6] : memref<8x128xf32, #tpu.memory_space<vmem>>, vector<8x128xf32>
    tpu.vector_store %arg5[%c0_5, %c0_6], %5 {strides = array<i32>} : memref<8x128xf32, #tpu.memory_space<vmem>>, vector<8x128xf32>,
    return
  }
  func.func @transform_0(%arg0: i32, %arg1: i32) -> (i32, i32) {
    %c0_i32 = arith.constant 0 : i32
    %c0_i32_0 = arith.constant 0 : i32
    return %arg0, %c0_i32 : i32, i32
  }
  func.func @transform_1(%arg0: i32, %arg1: i32) -> (i32, i32) {
    %c0_i32 = arith.constant 0 : i32
    %c0_i32_0 = arith.constant 0 : i32
    return %c0_i32, %arg1 : i32, i32
  }
  func.func @transform_2(%arg0: i32, %arg1: i32) -> (i32, i32) {
    %c0_i32 = arith.constant 0 : i32
    %c0_i32_0 = arith.constant 0 : i32
    return %c0_i32, %arg1 : i32, i32
  }
  func.func @transform_3(%arg0: i32, %arg1: i32) -> (i32, i32) {
    %c0_i32 = arith.constant 0 : i32
    return %arg0, %arg1 : i32, i32
  }
}

</mosaic_0001>

<bundles_post_ra>
// kernel: classifier_forward.1
= control target key start
LH: loop header
LB: loop body
LE: loop exit
PB: predicated region body
PF: predicated region fallthrough
CT: control target
= control target key end

     0   :  { %v193_v0 = vmov 0.0|0.0   ;;  %vm194_vm0 = vmmov 0   ;;  %v195_v4 = vmov 0.0   ;;  %s273_s1 = inlined_call_operand.vmem [shape: f32[128,128], index: 1, kind: input, shape index: {}]   ;;  %s274_s0 = inlined_call_operand.vmem [shape: f32[8,128], index: 0, kind: input, shape index: {}]   ;;  %s275_s2 = inlined_call_operand.vmem [shape: f32[1,128], index: 2, kind: input, shape index: {}]   ;;  %s276_s3 = inlined_call_operand.vmem [shape: f32[8,128], index: 3, kind: output, shape index: {}]  }
   0x1   :  { %166 = vmatprep.subr.bf16.mxu0 %v193_v0  ;;  %v15_v1 = vld [vmem:[%s273_s1] sm:$0xff]  ;;  %v16_v2 = vld [vmem:[%s273_s1 + $0x8] sm:$0xff]  ;;  %v17_v3 = vld [vmem:[%s273_s1 + $0x10] sm:$0xff]  ;;  %163 = vmatprep.mubr.msk.f32.mxu0 %vm194_vm0, %v195_v4 }
   0x2   :  { %v167_v5 = vpack.c.bf16 %v16_v2, %v15_v1  ;;  %v18_v6 = vld [vmem:[%s273_s1 + $0x18] sm:$0xff]  ;;  %v19_v8 = vld [vmem:[%s273_s1 + $0x20] sm:$0xff]  ;;  %v20_v9 = vld [vmem:[%s273_s1 + $0x28] sm:$0xff] }
   0x3   :  { %v170_v7 = vpack.c.bf16 %v18_v6, %v17_v3  ;;  %v173_v10 = vpack.c.bf16 %v20_v9, %v19_v8  ;;  %v21_v11 = vld [vmem:[%s273_s1 + $0x30] sm:$0xff]  ;;  %v22_v12 = vld [vmem:[%s273_s1 + $0x38] sm:$0xff]  ;;  %v23_v14 = vld [vmem:[%s273_s1 + $0x40] sm:$0xff] }
   0x4   :  { %168 = vmatpush3.bf16.msra.mxu0 %v167_v5  ;;  %v176_v13 = vpack.c.bf16 %v22_v12, %v21_v11  ;;  %v24_v15 = vld [vmem:[%s273_s1 + $0x48] sm:$0xff]  ;;  %v25_v17 = vld [vmem:[%s273_s1 + $0x50] sm:$0xff]  ;;  %v26_v18 = vld [vmem:[%s273_s1 + $0x58] sm:$0xff] }
   0x5   :  { %169 = vmatprep.subr.bf16.mxu0 %v193_v0  ;;  %v179_v16 = vpack.c.bf16 %v24_v15, %v23_v14  ;;  %v182_v19 = vpack.c.bf16 %v26_v18, %v25_v17  ;;  %v27_v20 = vld [vmem:[%s273_s1 + $0x60] sm:$0xff]  ;;  %v28_v21 = vld [vmem:[%s273_s1 + $0x68] sm:$0xff]  ;;  %v29_v23 = vld [vmem:[%s273_s1 + $0x70] sm:$0xff] }
   0x6   :  { %v185_v22 = vpack.c.bf16 %v28_v21, %v27_v20  ;;  %v30_v24 = vld [vmem:[%s273_s1 + $0x78] sm:$0xff]  ;;  %v14_v26 = vld [vmem:[%s274_s0] sm:$0xff] }
   0x7   :  { %v188_v25 = vpack.c.bf16 %v30_v24, %v29_v23  ;;  %v113_v27 = vld [vmem:[%s275_s2] ss:$0 sm:$0xff] }
   0x8   :  { %171 = vmatpush3.bf16.msra.mxu0 %v170_v7 }
   0x9   :  { %172 = vmatprep.subr.bf16.mxu0 %v193_v0 }
   0xc   :  { %174 = vmatpush3.bf16.msra.mxu0 %v173_v10 }
   0xd   :  { %175 = vmatprep.subr.bf16.mxu0 %v193_v0 }
  0x10   :  { %177 = vmatpush3.bf16.msra.mxu0 %v176_v13 }
  0x11   :  { %178 = vmatprep.subr.bf16.mxu0 %v193_v0 }
  0x14   :  { %180 = vmatpush3.bf16.msra.mxu0 %v179_v16 }
  0x15   :  { %181 = vmatprep.subr.bf16.mxu0 %v193_v0 }
  0x18   :  { %183 = vmatpush3.bf16.msra.mxu0 %v182_v19 }
  0x19   :  { %184 = vmatprep.subr.bf16.mxu0 %v193_v0 }
  0x1c   :  { %186 = vmatpush3.bf16.msra.mxu0 %v185_v22 }
  0x1d   :  { %187 = vmatprep.subr.bf16.mxu0 %v193_v0 }
  0x20   :  { %189 = vmatpush3.bf16.msra.mxu0 %v188_v25 }
  0x23   :  { %164 = vmatmul.mubr.f32.vlgmr.msra.gmra.mrb[0].mxu0 %v14_v26 }
  0xf6   :  { %v104_v28 = vpop.f32.mrb[0].mxu0 }
  0xf7   :  { %v105_v29 = vadd.f32 %v113_v27, %v104_v28  ;;  %v165_v30 = vpop.f32.mrb[1].mxu0 }
  0xf9   :  { %108 = vst [vmem:[%s276_s3] sm:$0xff] %v105_v29 }

</bundles_post_ra>
